<compile_context>
chip_gen: v5e
topology: v5e:2x2
jax: 0.10.0
libtpu: 0.0.40
codegen_flags: <defaults>
</compile_context>

<pallas_src>
import functools

import jax
import jax.numpy as jnp
from jax.experimental import pallas as pl
from jax.experimental.pallas import tpu as pltpu

_LANE = 128
_NEG_INF = -9.0e15


def _round_up(x, m):
    return (x + m - 1) // m * m


def _pick_block_rows(n, cap=256):
    # Row-tile heuristic: multiples of 32 (int8-adj sublane packing friendly).
    # cap=256 keeps (tm, N) adj tiles comfortably inside v7x's 64 MiB VMEM for
    # realistic N; v5e/v6e (128 MiB) can push cap to 512-1024.
    for tm in (512, 256, 128, 64, 32):
        if tm <= cap and tm <= n and n % tm == 0:
            return tm
    return n  # fall back to a single full-height block


def _proj_kernel(h_ref, w_ref, a12_ref, wh_ref, f_ref):
    # Wh = h @ W on the MXU with f32 accumulation.
    wh32 = jnp.dot(h_ref[...], w_ref[...], preferred_element_type=jnp.float32)
    # f[:, 0] = Wh @ a1, f[:, 1] = Wh @ a2  (one fused 2-wide dot, f32).
    f_ref[...] = jnp.dot(wh32, a12_ref[...], preferred_element_type=jnp.float32)
    wh_ref[...] = wh32.astype(wh_ref.dtype)


def _attn_kernel(alpha, f1_ref, f2_ref, adj_ref, wh_ref, out_ref):
    # e[i, j] = leakyrelu(f1[i] + f2[j]); f2 already laid out as a (1, N) row,
    # so this is a pure VPU broadcast-add (no per-tile transpose).
    e = f1_ref[...] + f2_ref[...]                       # (tm, N) f32
    e = jnp.where(e > 0, e, alpha * e)                  # LeakyReLU(alpha)

    # Adjacency mask (adj streamed as int8) + row softmax, all in f32.
    masked = jnp.where(adj_ref[...] != 0, e, _NEG_INF)
    m = jnp.max(masked, axis=1, keepdims=True)
    p = jnp.exp(masked - m)
    denom = jnp.sum(p, axis=1, keepdims=True)
    inv = pl.reciprocal(denom, approx=True)             # EUP slot (cheap)
    inv = inv * (2.0 - denom * inv)                     # one Newton step
    att = p * inv

    # TODO(synk): F.dropout(attention) skipped — eval mode (training=False).

    # Aggregate neighbours on the MXU (operands optionally bf16, f32 accum).
    h_prime = jnp.dot(att.astype(wh_ref.dtype), wh_ref[...],
                      preferred_element_type=jnp.float32)   # (tm, Fpad)

    # ELU (concat=True branch); exp only on the non-positive branch.
    out_ref[...] = jnp.where(h_prime > 0, h_prime,
                             jnp.exp(jnp.minimum(h_prime, 0.0)) - 1.0)


def gat_layer(h, adj, W, a, alpha=0.2, *, block_rows=None,
              mxu_dtype=jnp.float32):
    """Pallas GAT layer forward (eval mode, concat=True, glimpse_mode=False).

    h:   (N, in_features) f32
    adj: (N, N) adjacency (any numeric dtype; mask is `adj > 0`)
    W:   (in_features, out_features) f32
    a:   (2 * out_features, 1) f32
    """
    N, fin = h.shape
    fout = W.shape[1]
    fp = _round_up(fout, _LANE)          # lane-dense output / Wh feature dim

    if block_rows is None:
        block_rows = _pick_block_rows(N)
    assert N % block_rows == 0, "block_rows must divide N"
    grid = (N // block_rows,)

    # Wrapper-side layout prep (cheap, done once):
    #  - pad W's output dim with zero columns -> padded Wh columns are zero,
    #    so padded h_prime columns are elu(0)=0 and get sliced off below.
    #  - fuse a1||a2 into a single (fp, 2) operand.
    #  - cast MXU operands; compress adj to int8 (4x less HBM traffic).
    w_p = jnp.zeros((fin, fp), jnp.float32).at[:, :fout].set(W).astype(mxu_dtype)
    a12 = jnp.zeros((fp, 2), jnp.float32)
    a12 = a12.at[:fout, 0].set(a[:fout, 0]).at[:fout, 1].set(a[fout:, 0])
    h_c = h.astype(mxu_dtype)
    adj_i8 = (adj > 0).astype(jnp.int8)

    cparams = pltpu.CompilerParams(dimension_semantics=("parallel",))

    # --- Stage 1: projection (row-tiled) -> Wh (N, fp), f = [f1 | f2] (N, 2).
    wh, f = pl.pallas_call(
        _proj_kernel,
        grid=grid,
        in_specs=[
            pl.BlockSpec((block_rows, fin), lambda i: (i, 0)),
            pl.BlockSpec((fin, fp), lambda i: (0, 0)),   # resident
            pl.BlockSpec((fp, 2), lambda i: (0, 0)),     # resident
        ],
        out_specs=(
            pl.BlockSpec((block_rows, fp), lambda i: (i, 0)),
            pl.BlockSpec((block_rows, 2), lambda i: (i, 0)),
        ),
        out_shape=(
            jax.ShapeDtypeStruct((N, fp), mxu_dtype),
            jax.ShapeDtypeStruct((N, 2), jnp.float32),
        ),
        compiler_params=cparams,
    )(h_c, w_p, a12)

    f1 = f[:, 0:1]                   # (N, 1) column, blocked per row tile
    f2_row = f[:, 1].reshape(1, N)   # (1, N) row — transposed ONCE, not per-tile

    # --- Stage 2: masked softmax attention + aggregation, row-tiled over N.
    kernel = functools.partial(_attn_kernel, float(alpha))
    out_p = pl.pallas_call(
        kernel,
        grid=grid,
        in_specs=[
            pl.BlockSpec((block_rows, 1), lambda i: (i, 0)),
            pl.BlockSpec((1, N), lambda i: (0, 0)),      # resident row vector
            pl.BlockSpec((block_rows, N), lambda i: (i, 0)),   # adj row tile
            pl.BlockSpec((N, fp), lambda i: (0, 0)),     # Wh slab, resident
        ],
        out_specs=pl.BlockSpec((block_rows, fp), lambda i: (i, 0)),
        out_shape=jax.ShapeDtypeStruct((N, fp), jnp.float32),
        compiler_params=cparams,
    )(f1, f2_row, adj_i8, wh)

    return out_p[:, :fout]


def _xavier_uniform(key, shape, gain):
    fan_in, fan_out = shape[0], shape[1]
    bound = gain * jnp.sqrt(6.0 / (fan_in + fan_out))
    return jax.random.uniform(key, shape, jnp.float32, -bound, bound)


if __name__ == "__main__":
    # Small synthetic problem: N=256 nodes, in_features=32, out_features=16.
    N, in_features, out_features = 256, 32, 16
    alpha = 0.2

    key = jax.random.PRNGKey(0)
    k_h, k_adj, k_w, k_a = jax.random.split(key, 4)

    # Deterministic parameter init mirroring nn.init.xavier_uniform_(gain=1.414).
    W = _xavier_uniform(k_w, (in_features, out_features), gain=1.414)
    a = _xavier_uniform(k_a, (2 * out_features, 1), gain=1.414)

    # Inputs: node features and a binary adjacency matrix (with self-loops).
    h = jax.random.normal(k_h, (N, in_features), jnp.float32)
    adj = (jax.random.uniform(k_adj, (N, N)) > 0.5).astype(jnp.float32)
    adj = jnp.maximum(adj, jnp.eye(N, dtype=jnp.float32))

    # f32 MXU path (block_rows=64 -> 4-step pipelined grid).
    out = gat_layer(h, adj, W, a, alpha=alpha, block_rows=64)
    jax.block_until_ready(out)

    # Pure-JAX reference of the same math (PyTorch forward semantics).
    Wh = h @ W
    e = Wh @ a[:out_features] + (Wh @ a[out_features:]).T
    e = jnp.where(e > 0, e, alpha * e)
    att = jnp.where(adj > 0, e, -9.0e15)
    att = jax.nn.softmax(att, axis=1)
    ref = jax.nn.elu(att @ Wh)
    assert jnp.allclose(out, ref, atol=1e-4, rtol=1e-4)

    # bf16 MXU operands (v6e/v7x fast path), f32 accumulation & f32 softmax.
    out_bf16 = gat_layer(h, adj, W, a, alpha=alpha, block_rows=64,
                         mxu_dtype=jnp.bfloat16)
    jax.block_until_ready(out_bf16)
    assert jnp.allclose(out_bf16, ref, atol=1.5e-1, rtol=1.5e-1)

    print("KERNEL_OK")
</pallas_src>

<mosaic_0001>
module attributes {stable_mosaic.version = 11 : i64} {
  func.func @_proj_kernel(%arg0: i32, %arg1: memref<64x32xf32, #tpu.memory_space<vmem>>, %arg2: memref<32x128xf32, #tpu.memory_space<vmem>>, %arg3: memref<128x2xf32, #tpu.memory_space<vmem>>, %arg4: memref<64x128xf32, #tpu.memory_space<vmem>>, %arg5: memref<64x2xf32, #tpu.memory_space<vmem>>) attributes {dimension_semantics = [#tpu.dimension_semantics<parallel>], iteration_bounds = array<i64: 4>, scalar_prefetch = 0 : i64, scratch_operands = 0 : i64, tpu.core_type = #tpu.core_type<tc>, window_params = [{transform_indices = @transform_0, window_bounds = array<i64: 64, 32>}, {pipeline_mode = #tpu.pipeline_mode<synchronous>, transform_indices = @transform_1, window_bounds = array<i64: 32, 128>}, {pipeline_mode = #tpu.pipeline_mode<synchronous>, transform_indices = @transform_2, window_bounds = array<i64: 128, 2>}, {transform_indices = @transform_3, window_bounds = array<i64: 64, 128>}, {transform_indices = @transform_4, window_bounds = array<i64: 64, 2>}]} {
    %c0 = arith.constant 0 : index
    %c0_0 = arith.constant 0 : index
    %0 = vector.load %arg1[%c0, %c0_0] : memref<64x32xf32, #tpu.memory_space<vmem>>, vector<64x32xf32>
    %c0_1 = arith.constant 0 : index
    %c0_2 = arith.constant 0 : index
    %1 = vector.load %arg2[%c0_1, %c0_2] : memref<32x128xf32, #tpu.memory_space<vmem>>, vector<32x128xf32>
    %cst = arith.constant dense<0.000000e+00> : vector<64x128xf32>
    %2 = tpu.matmul %0, %1, %cst {dimension_numbers = #tpu.dot_dimension_numbers<[1], [0], [0], [1], [0, 0, 1, 1], [], []>} : vector<64x32xf32>, vector<32x128xf32>, vector<64x128xf32> -> vector<64x128xf32>
    %c0_3 = arith.constant 0 : index
    %c0_4 = arith.constant 0 : index
    %3 = vector.load %arg3[%c0_3, %c0_4] : memref<128x2xf32, #tpu.memory_space<vmem>>, vector<128x2xf32>
    %cst_5 = arith.constant dense<0.000000e+00> : vector<64x2xf32>
    %4 = tpu.matmul %2, %3, %cst_5 {dimension_numbers = #tpu.dot_dimension_numbers<[1], [0], [0], [1], [0, 0, 1, 1], [], []>} : vector<64x128xf32>, vector<128x2xf32>, vector<64x2xf32> -> vector<64x2xf32>
    %c0_6 = arith.constant 0 : index
    %c0_7 = arith.constant 0 : index
    %5 = vector.load %arg5[%c0_6, %c0_7] : memref<64x2xf32, #tpu.memory_space<vmem>>, vector<64x2xf32>
    tpu.vector_store %arg5[%c0_6, %c0_7], %4 {strides = array<i32>} : memref<64x2xf32, #tpu.memory_space<vmem>>, vector<64x2xf32>,
    %c0_8 = arith.constant 0 : index
    %c0_9 = arith.constant 0 : index
    %6 = vector.load %arg4[%c0_8, %c0_9] : memref<64x128xf32, #tpu.memory_space<vmem>>, vector<64x128xf32>
    tpu.vector_store %arg4[%c0_8, %c0_9], %2 {strides = array<i32>} : memref<64x128xf32, #tpu.memory_space<vmem>>, vector<64x128xf32>,
    return
  }
  func.func @transform_0(%arg0: i32) -> (i32, i32) {
    %c0_i32 = arith.constant 0 : i32
    %c0_i32_0 = arith.constant 0 : i32
    return %arg0, %c0_i32 : i32, i32
  }
  func.func @transform_1(%arg0: i32) -> (i32, i32) {
    %c0_i32 = arith.constant 0 : i32
    %c0_i32_0 = arith.constant 0 : i32
    %c0_i32_1 = arith.constant 0 : i32
    return %c0_i32, %c0_i32_0 : i32, i32
  }
  func.func @transform_2(%arg0: i32) -> (i32, i32) {
    %c0_i32 = arith.constant 0 : i32
    %c0_i32_0 = arith.constant 0 : i32
    %c0_i32_1 = arith.constant 0 : i32
    return %c0_i32, %c0_i32_0 : i32, i32
  }
  func.func @transform_3(%arg0: i32) -> (i32, i32) {
    %c0_i32 = arith.constant 0 : i32
    %c0_i32_0 = arith.constant 0 : i32
    return %arg0, %c0_i32 : i32, i32
  }
  func.func @transform_4(%arg0: i32) -> (i32, i32) {
    %c0_i32 = arith.constant 0 : i32
    %c0_i32_0 = arith.constant 0 : i32
    return %arg0, %c0_i32 : i32, i32
  }
}

</mosaic_0001>

<bundles_post_ra>
// kernel: tpu_custom_call.1
= control target key start
LH: loop header
LB: loop body
LE: loop exit
PB: predicated region body
PF: predicated region fallthrough
CT: control target
= control target key end

     0   :  { %10 = vsyncpa [#allocation3], 0  ;;  %s852_s0 = inlined_call_operand.vmem [shape: f32[256,32], index: 0, kind: input, shape index: {}]   ;;  %s853_s1 = inlined_call_operand.vmem [shape: f32[32,128], index: 1, kind: input, shape index: {}]   ;;  %s854_s2 = inlined_call_operand.vmem [shape: f32[128,2], index: 2, kind: input, shape index: {}]   ;;  %s855_s3 = inlined_call_operand.hbm [shape: f32[256,128], index: 3, kind: output, shape index: {0}]   ;;  %s856_s4 = inlined_call_operand.vmem [shape: f32[256,2], index: 4, kind: output, shape index: {1}]  }
   0x1   :  { %12 = vsyncpa [#allocation3 + $0x1], 0  ;;  %s668_s15 = smov 0   ;;  %s670_s16 = smov 0  }
   0x2   :  { %s672_s17 = smov 0   ;;  %s674_s18 = smov 0  }
   0x3 LB: > { %s689_s19 = sadd.s32 4294967295, %s639_s18   ;;  %s477_s20 = sadd.s32 4294967294, %s639_s18   ;;  %s639_s18 = sphi %s674_s18, %s862_s18   ;;  %s635_s17 = sphi %s672_s17, %s861_s17   ;;  %s631_s16 = sphi %s670_s16, %s860_s16   ;;  %s627_s15 = sphi %s668_s15, %s859_s15  }
   0x4   : > { %s693_s21 = sadd.s32 1, %s639_s18   ;;  %s93_s22 = sadd.s32 1, %s635_s17 }
   0x5   : > { %s90_s23 = ssub.s32 %s639_s18, %s693_s21  ;;  %p103_p0 = scmp.ne.s32.totalorder %s635_s17, %s631_s16 }
   0x6   : > { %p91_p1 = scmp.eq.s32.totalorder %s90_s23, 0  ;;  %p104_p2 = scmp.eq.s32.totalorder %s689_s19, 3 }
   0x7   : > { %p109_p3 = scmp.ne.s32.totalorder %s631_s16, %s627_s15  ;;  %p110_p4 = scmp.eq.s32.totalorder %s477_s20, 3 }
   0x8   : > { %s704_s24 = scalar_select %p91_p1, %s635_s17, %s93_s22  }
   0x9   : > { %p706_p5 = por %p104_p2, %p103_p0  ;;  %p710_p6 = por %p110_p4, %p109_p3 }
   0xa   : > { %p480_p7 = scmp.ge.s32.totalorder %s639_s18, 1  ;;  %p169_p8 = scmp.lt.s32.totalorder %s639_s18, 5 }
   0xc   : > { %p170_p9 = pnand %p480_p7, %p169_p8 }
   0xd   : > { %s482_s5 = sshll.u32 (!%p170_p9), %s689_s19, 3  ;;  %s190_s27 = sand.u32 (!%p170_p9), 1, %s631_s16  }
   0xe   : > { %173 = sbr.rel (%p170_p9) target bundleno = 326 (0x146), region = 32  ;;  %p201_p10 = scmp.lt.s32.totalorder (!%p170_p9), %s482_s5, 31 }
   0xf   : > { %s481_s28 = sshll.u32 (!%p170_p9), %s190_s27, 6  ;;  %s366_s11 = scalar_lea.sflag (!%p170_p9), [#allocation3], %s190_s27 }
  0x10   : > { %s192_s29 = scalar_lea.vmem (!%p170_p9), [#allocation2], %s481_s28 }
  0x11   : > { %s383_s8 = sshll.u32 (!%p170_p9), %s192_s29, 4  ;;  %s384_s8 = int_to_ptr.vmem [resolvable:$true] %s383_s8 }
  0x13   : > { %v224_v0 = vld [vmem:[%s853_s1 + $0x18] sm:$0xff]  ;;  %v223_v1 = vld [vmem:[%s853_s1 + $0x10] sm:$0xff]  ;;  %v222_v2 = vld [vmem:[%s853_s1 + $0x8] sm:$0xff]  ;;  %s864_s5 = smov (!%p201_p10, %s482_s5), 31  ;;  %vm225_vm0 = vcmask 261120  }
  0x14   : > { %262 = vmatpush.msra.mxu0 %v224_v0  ;;  %500 = vmatpush.msra.mxu3 %v224_v0  ;;  %v221_v3 = vld [vmem:[%s853_s1] sm:$0xff]  ;;  %s483_s10 = sshll.u32 %s864_s5, 3  ;;  %v306_v8 = vld [vmem:[%s854_s2 + $0x78] sm:$0xff]  ;;  %v305_v9 = vld [vmem:[%s854_s2 + $0x70] sm:$0xff] }
  0x15   : > { %s737_s13 = scalar_lea.vmem %s852_s0, %s483_s10  ;;  %307 = vmatpush.msra.mxu1 %v306_v8  ;;  %v304_v10 = vld [vmem:[%s854_s2 + $0x68] sm:$0xff]  ;;  %504 = vmatpush.msra.mxu2 %v306_v8  ;;  %v303_v11 = vld [vmem:[%s854_s2 + $0x60] sm:$0xff]  ;;  %v302_v13 = vld [vmem:[%s854_s2 + $0x58] sm:$0xff] }
  0x16   : > { %263 = vmatpush.msra.mxu0 %v223_v1  ;;  %501 = vmatpush.msra.mxu3 %v223_v1  ;;  %v213_v4 = vld [vmem:[%s737_s13] sm:$0xff]  ;;  %v219_v5 = vld [vmem:[%s737_s13 + $0x30] sm:$0xff]  ;;  %v214_v6 = vld [vmem:[%s737_s13 + $0x8] sm:$0xff] }
  0x17   : > { %v220_v7 = vld [vmem:[%s737_s13 + $0x38] sm:$0xff]  ;;  %308 = vmatpush.msra.mxu1 %v305_v9  ;;  %506 = vmatpush.msra.mxu2 %v305_v9  ;;  %v215_v12 = vld [vmem:[%s737_s13 + $0x10] sm:$0xff]  ;;  %v300_v15 = vld [vmem:[%s854_s2 + $0x48] sm:$0xff] }
  0x18   : > { %264 = vmatpush.msra.mxu0 %v222_v2  ;;  %502 = vmatpush.msra.mxu3 %v222_v2  ;;  %v301_v14 = vld [vmem:[%s854_s2 + $0x50] sm:$0xff]  ;;  %v299_v16 = vld [vmem:[%s854_s2 + $0x40] sm:$0xff]  ;;  %v216_v17 = vld [vmem:[%s737_s13 + $0x18] sm:$0xff] }
  0x19   : > { %309 = vmatpush.msra.mxu1 %v304_v10  ;;  %508 = vmatpush.msra.mxu2 %v304_v10  ;;  %v298_v18 = vld [vmem:[%s854_s2 + $0x38] sm:$0xff]  ;;  %v297_v19 = vld [vmem:[%s854_s2 + $0x30] sm:$0xff]  ;;  %v296_v20 = vld [vmem:[%s854_s2 + $0x28] sm:$0xff] }
  0x1a   : > { %265 = vmatpush.msra.mxu0 %v221_v3  ;;  %503 = vmatpush.msra.mxu3 %v221_v3  ;;  %v295_v21 = vld [vmem:[%s854_s2 + $0x20] sm:$0xff]  ;;  %v294_v23 = vld [vmem:[%s854_s2 + $0x18] sm:$0xff]  ;;  %v293_v24 = vld [vmem:[%s854_s2 + $0x10] sm:$0xff] }
  0x1b   : > { %486 = vmatmul.msk.f32.vlgmr.msra.gmra.mxu0 %vm225_vm0, %v213_v4  ;;  %492 = vmatmul.msk.f32.vlgmr.msra.gmra.mxu3 %vm225_vm0, %v219_v5  ;;  %v217_v22 = vld [vmem:[%s737_s13 + $0x20] sm:$0xff]  ;;  %v292_v25 = vld [vmem:[%s854_s2 + $0x8] sm:$0xff] }
  0x1c   : > { %505 = vmatpush.msrb.mxu3 %v306_v8  ;;  %310 = vmatpush.msra.mxu1 %v303_v11  ;;  %v218_v26 = vld [vmem:[%s737_s13 + $0x28] sm:$0xff]  ;;  %v291_v27 = vld [vmem:[%s854_s2] sm:$0xff]  ;;  %s499_s13 = sshll.u32 %s689_s19, 6  ;;  %s597_s19 = scalar_lea.hbm %s855_s3, 256 }
  0x1d   : > { %510 = vmatpush.msra.mxu2 %v303_v11  ;;  %s382_s7 = scalar_lea.hbm %s855_s3, %s499_s13 }
  0x1e   : > { %507 = vmatpush.msrb.mxu3 %v305_v9  ;;  %311 = vmatpush.msra.mxu1 %v302_v13  ;;  %s385_s9 = sshll.u32 %s382_s7, 4  ;;  %s386_s9 = int_to_ptr.hbm [resolvable:$true] %s385_s9 }
  0x1f   : > { %512 = vmatpush.msra.mxu2 %v302_v13  ;;  %s591_s12 = sshra.s32 %s386_s9, 4  ;;  %s592_s12 = int_to_ptr.hbm [resolvable:$true] %s591_s12 }
  0x20   : > { %509 = vmatpush.msrb.mxu3 %v304_v10  ;;  %312 = vmatpush.msra.mxu1 %v301_v14  ;;  %s593_s14 = scalar_lea.hbm %s592_s12, 64  ;;  %p598_p0 = scmp.lt.s32.totalorder %s592_s12, %s855_s3 }
  0x21   : > { %514 = vmatpush.msra.mxu2 %v301_v14  ;;  %p594_p11 = scmp.ne.s32.totalorder %s592_s12, %s593_s14  ;;  %p599_p1 = scmp.lt.s32.totalorder %s597_s19, %s593_s14 }
  0x22   : > { %511 = vmatpush.msrb.mxu3 %v303_v11  ;;  %313 = vmatpush.msra.mxu1 %v300_v15 }
  0x23   : > { %487 = vmatmul.msk.f32.gmra.mxu0 %vm225_vm0, %v214_v6  ;;  %493 = vmatmul.msk.f32.gmra.mxu3 %vm225_vm0, %v220_v7  ;;  %p595_p12 = pnand %p594_p11, %p706_p5  ;;  %p600_p2 = por %p599_p1, %p598_p0 }
  0x24   : > { %513 = vmatpush.msrb.mxu3 %v302_v13  ;;  %516 = vmatpush.msra.mxu2 %v300_v15 }
  0x25   : > { %314 = vmatpush.msra.mxu1 %v299_v16  ;;  %p596_p13 = pneg %p595_p12 }
  0x26   : > { %515 = vmatpush.msrb.mxu3 %v301_v14  ;;  %518 = vmatpush.msra.mxu2 %v299_v16 }
  0x27   : > { %315 = vmatpush.msra.mxu1 %v298_v18  ;;  %p601_p3 = pnand %p600_p2, %p596_p13 }
  0x28   : > { %517 = vmatpush.msrb.mxu3 %v300_v15  ;;  %520 = vmatpush.msra.mxu2 %v298_v18 }
  0x29   : > { %316 = vmatpush.msra.mxu1 %v297_v19 }
  0x2a   : > { %519 = vmatpush.msrb.mxu3 %v299_v16  ;;  %522 = vmatpush.msra.mxu2 %v297_v19 }
  0x2b   : > { %488 = vmatmul.msk.f32.gmra.mxu0 %vm225_vm0, %v215_v12  ;;  %317 = vmatpush.msra.mxu1 %v296_v20 }
  0x2c   : > { %521 = vmatpush.msrb.mxu3 %v298_v18  ;;  %524 = vmatpush.msra.mxu2 %v296_v20 }
  0x2d   : > { %318 = vmatpush.msra.mxu1 %v295_v21 }
  0x2e   : > { %523 = vmatpush.msrb.mxu3 %v297_v19  ;;  %526 = vmatpush.msra.mxu2 %v295_v21 }
  0x2f   : > { %319 = vmatpush.msra.mxu1 %v294_v23 }
  0x30   : > { %525 = vmatpush.msrb.mxu3 %v296_v20  ;;  %528 = vmatpush.msra.mxu2 %v294_v23 }
  0x31   : > { %320 = vmatpush.msra.mxu1 %v293_v24 }
  0x32   : > { %527 = vmatpush.msrb.mxu3 %v295_v21  ;;  %530 = vmatpush.msra.mxu2 %v293_v24 }
  0x33   : > { %489 = vmatmul.msk.f32.gmra.mxu0 %vm225_vm0, %v216_v17  ;;  %321 = vmatpush.msra.mxu1 %v292_v25 }
  0x34   : > { %529 = vmatpush.msrb.mxu3 %v294_v23  ;;  %532 = vmatpush.msra.mxu2 %v292_v25 }
  0x35   : > { %322 = vmatpush.msra.mxu1 %v291_v27 }
  0x36   : > { %531 = vmatpush.msrb.mxu3 %v293_v24  ;;  %534 = vmatpush.msra.mxu2 %v291_v27 }
  0x38   : > { %533 = vmatpush.msrb.mxu3 %v292_v25 }
  0x3a   : > { %535 = vmatpush.msrb.mxu3 %v291_v27 }
  0x3b   : > { %490 = vmatmul.msk.f32.gmra.mxu0 %vm225_vm0, %v217_v22 }
  0x43   : > { %491 = vmatmul.msk.f32.gmra.mxu0 %vm225_vm0, %v218_v26 }
  0x98   : > { %v267_v28 = vpop.f32.mrf.mxu0 }
  0x99   : > { %357 = vst [vmem:[%s192_s29] sm:$0xff] %v267_v28  ;;  %323 = vmatmul.f32.vlgmr.msra.gmra.mxu1 %v267_v28 }
  0x9e   : > { %v285_v29 = vpop.f32.mrf.mxu3 }
  0x9f   : > { %363 = vst [vmem:[%s192_s29 + $0x30] sm:$0xff] %v285_v29  ;;  %341 = vmatmul.f32.vlgmr.msrb.gmra.mxu3 %v285_v29 }
  0xa0   : > { %v270_v30 = vpop.f32.mrf.mxu0 }
  0xa1   : > { %358 = vst [vmem:[%s192_s29 + $0x8] sm:$0xff] %v270_v30  ;;  %326 = vmatmul.f32.gmra.mxu1 %v270_v30 }
  0xa6   : > { %v288_v31 = vpop.f32.mrf.mxu3 }
  0xa7   : > { %364 = vst [vmem:[%s192_s29 + $0x38] sm:$0xff] %v288_v31  ;;  %344 = vmatmul.f32.gmra.mxu3 %v288_v31 }
  0xa8   : > { %v273_v32 = vpop.f32.mrf.mxu0 }
  0xa9   : > { %359 = vst [vmem:[%s192_s29 + $0x10] sm:$0xff] %v273_v32  ;;  %329 = vmatmul.f32.gmra.mxu1 %v273_v32 }
  0xb0   : > { %v276_v33 = vpop.f32.mrf.mxu0 }
  0xb1   : > { %360 = vst [vmem:[%s192_s29 + $0x18] sm:$0xff] %v276_v33  ;;  %332 = vmatmul.f32.vlgmr.msra.gmra.mxu2 %v276_v33 }
  0xb8   : > { %v279_v34 = vpop.f32.mrf.mxu0 }
  0xb9   : > { %361 = vst [vmem:[%s192_s29 + $0x20] sm:$0xff] %v279_v34  ;;  %335 = vmatmul.f32.gmra.mxu2 %v279_v34 }
  0xc0   : > { %v282_v35 = vpop.f32.mrf.mxu0 }
  0xc1   : > { %362 = vst [vmem:[%s192_s29 + $0x28] sm:$0xff] %v282_v35  ;;  %338 = vmatmul.f32.gmra.mxu2 %v282_v35 }
  0xc2   : > { %604 = shalt.err (!%p601_p3)
}
  0xc3   : > { %s641_s27 = smov 128   ;;  %s642_s29 = smov 8   ;;  %vm348_vm1 = vcmask 15360  }
  0xc4   : > { %536 = dma.vmem_to_hbm [thread:$0]  (%p706_p5), %s384_s8, 1024, %s386_s9, %s366_s11, %s641_s27, %s641_s27, %s642_s29  }
  0xc5   : > { %s211_s6 = scalar_lea.vmem %s856_s4, %s483_s10 }
 0x116   : > { %v324_v36 = vpop.f32.mrf.mxu1 }
 0x117   : > { %349 = vst.msk [vmem:[%s211_s6] sm:$0xff] %vm348_vm1, %v324_v36 }
 0x11e   : > { %v327_v37 = vpop.f32.mrf.mxu1 }
 0x11f   : > { %350 = vst.msk [vmem:[%s211_s6 + $0x8] sm:$0xff] %vm348_vm1, %v327_v37 }
 0x122   : > { %v342_v38 = vpop.f32.mrf.mxu3 }
 0x123   : > { %355 = vst.msk [vmem:[%s211_s6 + $0x30] sm:$0xff] %vm348_vm1, %v342_v38 }
 0x126   : > { %v330_v39 = vpop.f32.mrf.mxu1 }
 0x127   : > { %351 = vst.msk [vmem:[%s211_s6 + $0x10] sm:$0xff] %vm348_vm1, %v330_v39 }
 0x12a   : > { %v345_v40 = vpop.f32.mrf.mxu3 }
 0x12b   : > { %356 = vst.msk [vmem:[%s211_s6 + $0x38] sm:$0xff] %vm348_vm1, %v345_v40 }
 0x134   : > { %v333_v41 = vpop.f32.mrf.mxu2 }
 0x135   : > { %352 = vst.msk [vmem:[%s211_s6 + $0x18] sm:$0xff] %vm348_vm1, %v333_v41 }
 0x13c   : > { %v336_v42 = vpop.f32.mrf.mxu2 }
 0x13d   : > { %353 = vst.msk [vmem:[%s211_s6 + $0x20] sm:$0xff] %vm348_vm1, %v336_v42 }
 0x144   : > { %v339_v43 = vpop.f32.mrf.mxu2 }
 0x145   : > { %354 = vst.msk [vmem:[%s211_s6 + $0x28] sm:$0xff] %vm348_vm1, %v339_v43 }
 0x146 PF: > { %p542_p4 = scmp.ge.s32.totalorder %s639_s18, 2  ;;  %s404_s25 = sand.u32 1, %s627_s15  }
 0x147   : > { %s405_s5 = scalar_lea.sflag [#allocation3], %s404_s25 }
 0x148   : > { %p539_p5 = pnand %p542_p4, %p710_p6 }
 0x14a   : > { %p540_p7 = pneg %p539_p5 }
 0x14c   : > { %622 = dma.done.wait (%p540_p7), %s405_s5, 1024  }
 0x14d   : > { %624 = vsyncadd (%p540_p7), %s405_s5, 4294966272  ;;  %p15_p8 = scmp.ge.s32.totalorder %s693_s21, 6   ;;  %s859_s15 = smov %s631_s16 }
 0x14e   : > { %s860_s16 = smov %s635_s17  ;;  %s861_s17 = smov %s704_s24 }
 0x14f   : > { %s862_s18 = smov %s693_s21  ;;  %17 = sbr.rel (!%p15_p8) target bundleno = 3 (0x3), region = 79 }
 0x154   :  { %419 = vsyncpa [#allocation3], 1 }
 0x155   :  { %421 = vsyncpa [#allocation3 + $0x1], 1 }

</bundles_post_ra>
